<compile_context>
chip_gen: v5e
topology: v5e:2x2
jax: 0.10.0
libtpu: 0.0.40
codegen_flags: <defaults>
</compile_context>

<pallas_src>
import math
import functools

import jax
import jax.numpy as jnp
from jax import lax
from jax.experimental import pallas as pl
from jax.experimental.pallas import tpu as pltpu


# ----------------------------------------------------------------------------
# Per-generation budgets (v5e/v6e: 128 MiB physical VMEM, v7x: 64 MiB)
# ----------------------------------------------------------------------------
def _query_phys_vmem():
    try:
        info = pltpu.get_tpu_info()
        cap = getattr(info, "vmem_capacity_bytes", None)
        if cap:
            return int(cap)
    except Exception:
        pass
    return 64 * 1024 * 1024  # conservative default


_PHYS_VMEM = _query_phys_vmem()
_BIG_VMEM = _PHYS_VMEM >= 100 * 1024 * 1024
_VMEM_LIMIT = min(96 * 1024 * 1024, (_PHYS_VMEM * 3) // 4)
_TQ_PREF = 512 if _BIG_VMEM else 128
_BM_PREF = 512 if _BIG_VMEM else 256
_BN_PREF = 512
_BK_PREF = 1024 if _BIG_VMEM else 512


def _pick_block(dim, pref, align):
    """Largest block <= pref that is a multiple of `align` and divides `dim`;
    falls back to the full dim (always a legal TPU block)."""
    if dim <= pref:
        return dim
    t = (pref // align) * align
    while t >= align:
        if dim % t == 0:
            return t
        t -= align
    return dim


# ----------------------------------------------------------------------------
# Kernel 1: tiled dense layer  y = x @ W + b   (MXU, bf16 operands, f32 accum)
# ----------------------------------------------------------------------------
def _linear_kernel(x_ref, w_ref, b_ref, o_ref, acc_ref):
    k = pl.program_id(2)

    @pl.when(k == 0)
    def _():
        acc_ref[...] = jnp.zeros_like(acc_ref)

    acc_ref[...] += jnp.dot(
        x_ref[...].astype(jnp.bfloat16),
        w_ref[...].astype(jnp.bfloat16),
        preferred_element_type=jnp.float32,
    )

    @pl.when(k == pl.num_programs(2) - 1)
    def _():
        o_ref[...] = (acc_ref[...] + b_ref[...]).astype(o_ref.dtype)


def linear(x2d, w, b, *, out_dtype=None,
           bm_pref=None, bn_pref=None, bk_pref=None):
    """x2d: (M, K); w: (K, N) (ideally bf16); b: (N,) f32 -> (M, N) out_dtype."""
    M, K = x2d.shape
    N = w.shape[1]
    out_dtype = out_dtype or x2d.dtype
    bm_pref = bm_pref or _BM_PREF
    bn_pref = bn_pref or _BN_PREF
    bk_pref = bk_pref or _BK_PREF

    # Pad M up to a multiple of 8 so a sublane-aligned block always exists.
    m_pad = (-M) % 8
    if m_pad:
        x2d = jnp.pad(x2d, ((0, m_pad), (0, 0)))
    Mp = M + m_pad

    bm = _pick_block(Mp, bm_pref, 8)      # sublane-aligned
    bk = _pick_block(K, bk_pref, 128)     # lane-aligned (or full)
    bn = _pick_block(N, bn_pref, 128)     # lane-aligned (or full)
    grid = (Mp // bm, N // bn, K // bk)   # reduction axis last

    out = pl.pallas_call(
        _linear_kernel,
        out_shape=jax.ShapeDtypeStruct((Mp, N), out_dtype),
        grid_spec=pltpu.PrefetchScalarGridSpec(
            num_scalar_prefetch=0,
            grid=grid,
            in_specs=[
                pl.BlockSpec((bm, bk), lambda i, j, k: (i, k)),
                pl.BlockSpec((bk, bn), lambda i, j, k: (k, j)),
                pl.BlockSpec((1, bn), lambda i, j, k: (0, j)),
            ],
            out_specs=pl.BlockSpec((bm, bn), lambda i, j, k: (i, j)),
            scratch_shapes=[pltpu.VMEM((bm, bn), jnp.float32)],
        ),
        compiler_params=pltpu.CompilerParams(
            dimension_semantics=("parallel", "parallel", "arbitrary"),
            vmem_limit_bytes=_VMEM_LIMIT,
        ),
    )(x2d, w, b.reshape(1, N).astype(jnp.float32))
    return out[:M] if m_pad else out


# ----------------------------------------------------------------------------
# Kernel 2: q-tiled scaled dot-product attention (one kernel body, two layouts)
#   scale is pre-folded into q; both matmuls bf16 -> f32 accumulation.
# ----------------------------------------------------------------------------
def _sdpa_kernel(*refs, emit_weights, has_mask):
    q_ref, k_ref, v_ref = refs[0], refs[1], refs[2]
    idx = 3
    m_ref = None
    if has_mask:
        m_ref = refs[3]
        idx = 4
    o_ref = refs[idx]
    w_ref = refs[idx + 1] if emit_weights else None

    q = q_ref[...].astype(jnp.bfloat16)        # (tq, D)   scale already folded in
    k = k_ref[...].astype(jnp.bfloat16)        # (Skv, D)
    v = v_ref[...].astype(jnp.bfloat16)        # (Skv, D)

    # Contract last dims of q and k directly (no K-tile transpose / relayout).
    scores = lax.dot_general(
        q, k, dimension_numbers=(((1,), (1,)), ((), ())),
        preferred_element_type=jnp.float32,
    )                                          # (tq, Skv)
    if has_mask:
        scores = scores + m_ref[...].astype(jnp.float32)   # pre-scaled additive bias

    m = jnp.max(scores, axis=-1, keepdims=True)
    e = jnp.exp(scores - m)
    s = jnp.sum(e, axis=-1, keepdims=True)
    # Exact reciprocal when the weights are observable output; approx (EUP) otherwise.
    p = e * pl.reciprocal(s, approx=not emit_weights)

    if emit_weights:
        w_ref[...] = p.astype(w_ref.dtype)

    o_ref[...] = lax.dot_general(
        p.astype(jnp.bfloat16), v, dimension_numbers=(((1,), (0,)), ((), ())),
        preferred_element_type=jnp.float32,
    ).astype(o_ref.dtype)


def _call_sdpa(inputs, in_specs, grid, o_shape, o_spec, w_shape, w_spec,
               emit_weights, has_mask):
    kernel = functools.partial(_sdpa_kernel, emit_weights=emit_weights,
                               has_mask=has_mask)
    cparams = pltpu.CompilerParams(
        dimension_semantics=("parallel", "parallel", "parallel"),
        vmem_limit_bytes=_VMEM_LIMIT,
    )
    if emit_weights:
        attn, weights = pl.pallas_call(
            kernel,
            out_shape=(o_shape, w_shape),
            grid=grid,
            in_specs=in_specs,
            out_specs=(o_spec, w_spec),
            compiler_params=cparams,
        )(*inputs)
        return attn, weights
    attn = pl.pallas_call(
        kernel,
        out_shape=o_shape,
        grid=grid,
        in_specs=in_specs,
        out_specs=o_spec,
        compiler_params=cparams,
    )(*inputs)
    return attn, None


def _sdpa_heads_blockspec(q_src, k_src, v_src, bias, *, num_heads, depth,
                          q_base, k_base, v_base, seq_q, seq_kv,
                          return_weights, tq_pref=None):
    """Head split expressed purely via BlockSpec index maps (depth % 128 == 0).
    q_src/k_src/v_src: (B, S, n_cols) projection outputs (possibly the same array).
    Returns attn in "concat" layout (B, seq_q, num_heads*depth) bf16."""
    B = q_src.shape[0]
    H = num_heads
    tq = _pick_block(seq_q, tq_pref or _TQ_PREF, 8)
    grid = (B, H, seq_q // tq)
    has_mask = bias is not None

    in_specs = [
        pl.BlockSpec((None, tq, depth),
                     lambda b, h, i, qb=q_base: (b, i, qb + h)),
        pl.BlockSpec((None, seq_kv, depth),
                     lambda b, h, i, kb=k_base: (b, 0, kb + h)),
        pl.BlockSpec((None, seq_kv, depth),
                     lambda b, h, i, vb=v_base: (b, 0, vb + h)),
    ]
    inputs = [q_src, k_src, v_src]
    if has_mask:
        in_specs.append(pl.BlockSpec((None, tq, seq_kv), lambda b, h, i: (b, i, 0)))
        inputs.append(bias)

    o_spec = pl.BlockSpec((None, tq, depth), lambda b, h, i: (b, i, h))
    o_shape = jax.ShapeDtypeStruct((B, seq_q, H * depth), jnp.bfloat16)
    w_spec = pl.BlockSpec((None, None, tq, seq_kv), lambda b, h, i: (b, h, i, 0))
    w_shape = jax.ShapeDtypeStruct((B, H, seq_q, seq_kv), jnp.bfloat16)

    return _call_sdpa(inputs, in_specs, grid, o_shape, o_spec, w_shape, w_spec,
                      emit_weights=return_weights, has_mask=has_mask)


def _sdpa_bhsd(q, k, v, bias, *, return_weights, tq_pref=None):
    """Fallback path on (B, H, S, depth) tensors (depth not a multiple of 128)."""
    B, H, Sq, depth = q.shape
    Skv = k.shape[2]
    tq = _pick_block(Sq, tq_pref or _TQ_PREF, 8)
    grid = (B, H, Sq // tq)
    has_mask = bias is not None

    in_specs = [
        pl.BlockSpec((None, None, tq, depth), lambda b, h, i: (b, h, i, 0)),
        pl.BlockSpec((None, None, Skv, depth), lambda b, h, i: (b, h, 0, 0)),
        pl.BlockSpec((None, None, Skv, depth), lambda b, h, i: (b, h, 0, 0)),
    ]
    inputs = [q, k, v]
    if has_mask:
        in_specs.append(pl.BlockSpec((None, tq, Skv), lambda b, h, i: (b, i, 0)))
        inputs.append(bias)

    o_spec = pl.BlockSpec((None, None, tq, depth), lambda b, h, i: (b, h, i, 0))
    o_shape = jax.ShapeDtypeStruct((B, H, Sq, depth), jnp.bfloat16)
    w_spec = pl.BlockSpec((None, None, tq, Skv), lambda b, h, i: (b, h, i, 0))
    w_shape = jax.ShapeDtypeStruct((B, H, Sq, Skv), jnp.bfloat16)

    return _call_sdpa(inputs, in_specs, grid, o_shape, o_spec, w_shape, w_spec,
                      emit_weights=return_weights, has_mask=has_mask)


# ----------------------------------------------------------------------------
# One-time weight preparation (hoisted out of the forward pass)
# ----------------------------------------------------------------------------
def prepare_params(params):
    """Fold 1/sqrt(depth) into Q, concatenate QKV, and cast weights to bf16.
    Idempotent: call once at init / load time and reuse across forward calls."""
    if params.get("prepared", False):
        return params
    H = params["num_heads"]
    d_model = params["w_q"].shape[0]
    depth = d_model // H
    scale = 1.0 / math.sqrt(depth)

    w_q = (params["w_q"] * scale).astype(jnp.bfloat16)
    b_q = (params["b_q"] * scale).astype(jnp.float32)
    w_k = params["w_k"].astype(jnp.bfloat16)
    w_v = params["w_v"].astype(jnp.bfloat16)

    return {
        "prepared": True,
        "num_heads": H,
        "d_model": d_model,
        "depth": depth,
        "w_qkv": jnp.concatenate([w_q, w_k, w_v], axis=1),
        "b_qkv": jnp.concatenate(
            [b_q, params["b_k"].astype(jnp.float32),
             params["b_v"].astype(jnp.float32)], axis=0),
        "w_q": w_q, "b_q": b_q,
        "w_k": w_k, "b_k": params["b_k"].astype(jnp.float32),
        "w_v": w_v, "b_v": params["b_v"].astype(jnp.float32),
        "w_o": params["w_o"].astype(jnp.bfloat16),
        "b_o": params["b_o"].astype(jnp.float32),
    }


# ----------------------------------------------------------------------------
# MultiHeadedAttention forward (glue in plain JAX, compute in Pallas)
# ----------------------------------------------------------------------------
def multi_headed_attention(params, query, key, value, mask=None,
                           return_weights=True):
    """query: (B, Sq, d_model); key/value: (B, Skv, d_model);
    mask: None or (B, Sq, Skv) of 0/1 (1 = masked).
    Returns (output (B, Sq, d_model) f32, attn_weights (B, H, Sq, Skv) bf16 or None)."""
    p = prepare_params(params)
    H, depth, d_model = p["num_heads"], p["depth"], p["d_model"]
    B, Sq, _ = query.shape
    Skv = key.shape[1]

    heads_via_blockspec = (depth % 128 == 0)
    self_attn = (query is key) and (query is value)

    q_src = k_src = v_src = None
    q2d = k2d = v2d = None

    if self_attn:
        # Fused QKV projection: one tiled matmul, one activation DMA, bf16 output.
        qkv = linear(query.reshape(B * Sq, d_model), p["w_qkv"], p["b_qkv"],
                     out_dtype=jnp.bfloat16)
        if heads_via_blockspec:
            src = qkv.reshape(B, Sq, 3 * d_model)
            q_src = k_src = v_src = src
            q_base, k_base, v_base = 0, H, 2 * H
        else:
            q2d, k2d, v2d = jnp.split(qkv, 3, axis=1)
    else:
        q2d = linear(query.reshape(B * Sq, d_model), p["w_q"], p["b_q"],
                     out_dtype=jnp.bfloat16)
        k2d = linear(key.reshape(B * Skv, d_model), p["w_k"], p["b_k"],
                     out_dtype=jnp.bfloat16)
        v2d = linear(value.reshape(B * Skv, d_model), p["w_v"], p["b_v"],
                     out_dtype=jnp.bfloat16)
        if heads_via_blockspec:
            q_src = q2d.reshape(B, Sq, d_model)
            k_src = k2d.reshape(B, Skv, d_model)
            v_src = v2d.reshape(B, Skv, d_model)
            q_base = k_base = v_base = 0

    # Pre-scaled additive bias in bf16, computed once (not per head in-kernel).
    bias = None
    if mask is not None:
        bias = (mask.astype(jnp.float32) * (-1000000000.0)).astype(jnp.bfloat16)

    if heads_via_blockspec:
        attn, weights = _sdpa_heads_blockspec(
            q_src, k_src, v_src, bias,
            num_heads=H, depth=depth,
            q_base=q_base, k_base=k_base, v_base=v_base,
            seq_q=Sq, seq_kv=Skv, return_weights=return_weights)
        concat2d = attn.reshape(B * Sq, d_model)     # already in concat layout
    else:
        def split_heads(y2d, S):
            return y2d.reshape(B, S, H, depth).transpose(0, 2, 1, 3)
        q = split_heads(q2d, Sq)
        k = split_heads(k2d, Skv)
        v = split_heads(v2d, Skv)
        attn, weights = _sdpa_bhsd(q, k, v, bias, return_weights=return_weights)
        concat2d = attn.transpose(0, 2, 1, 3).reshape(B * Sq, d_model)

    # TODO(synk): training-mode dropout on attn_weights not implemented (eval identity).
    out = linear(concat2d, p["w_o"], p["b_o"], out_dtype=jnp.float32)
    return out.reshape(B, Sq, d_model), weights


# ----------------------------------------------------------------------------
# Deterministic parameter init (PyTorch nn.Linear-style uniform bounds)
# ----------------------------------------------------------------------------
def init_params(key, d_model, num_heads):
    bound = 1.0 / math.sqrt(d_model)
    keys = jax.random.split(key, 8)

    def u(k, shape):
        return jax.random.uniform(k, shape, jnp.float32, -bound, bound)

    return {
        "num_heads": num_heads,
        "w_q": u(keys[0], (d_model, d_model)), "b_q": u(keys[1], (d_model,)),
        "w_k": u(keys[2], (d_model, d_model)), "b_k": u(keys[3], (d_model,)),
        "w_v": u(keys[4], (d_model, d_model)), "b_v": u(keys[5], (d_model,)),
        "w_o": u(keys[6], (d_model, d_model)), "b_o": u(keys[7], (d_model,)),
    }


# ----------------------------------------------------------------------------
# Pure-JAX f32 reference for correctness check
# ----------------------------------------------------------------------------
def reference(params, query, key, value, mask=None):
    B, Sq, d_model = query.shape
    Skv = key.shape[1]
    H = params["num_heads"]
    depth = d_model // H

    def proj(x, w, b):
        S = x.shape[1]
        return (x @ w + b).reshape(B, S, H, depth).transpose(0, 2, 1, 3)

    q = proj(query, params["w_q"], params["b_q"])
    k = proj(key, params["w_k"], params["b_k"])
    v = proj(value, params["w_v"], params["b_v"])

    scores = jnp.einsum("bhqd,bhkd->bhqk", q, k) / math.sqrt(depth)
    if mask is not None:
        scores = scores + mask[:, None, :, :].astype(jnp.float32) * (-1e9)
    w = jax.nn.softmax(scores, axis=-1)
    attn = jnp.einsum("bhqk,bhkd->bhqd", w, v)
    concat = attn.transpose(0, 2, 1, 3).reshape(B, Sq, d_model)
    return concat @ params["w_o"] + params["b_o"], w


if __name__ == "__main__":
    root = jax.random.PRNGKey(0)
    k_params, k_x, k_k, k_v, k_params2, k_x2 = jax.random.split(root, 6)

    # ---------------- Test 1: small shapes (depth=8 -> transpose fallback path) ----
    B, S, d_model, num_heads = 2, 8, 32, 4
    raw = init_params(k_params, d_model, num_heads)
    prepared = prepare_params(raw)   # hoisted one-time weight prep
    x = jax.random.normal(k_x, (B, S, d_model), jnp.float32)

    # causal-style 0/1 mask (1 = masked), broadcast over heads as in the module
    mask = (jnp.arange(S)[None, :, None] < jnp.arange(S)[None, None, :]).astype(
        jnp.float32)
    mask = jnp.broadcast_to(mask, (B, S, S))

    out, attn_w = multi_headed_attention(prepared, x, x, x, mask)
    out = jax.block_until_ready(out)
    attn_w = jax.block_until_ready(attn_w)
    ref_out, ref_w = reference(raw, x, x, x, mask)
    assert jnp.allclose(out, ref_out, atol=5e-2, rtol=5e-2), "self-attn output mismatch"
    assert jnp.allclose(attn_w.astype(jnp.float32), ref_w, atol=2e-2, rtol=2e-2), \
        "self-attn weights mismatch"

    # cross-attention (separate projection path)
    key_in = jax.random.normal(k_k, (B, S, d_model), jnp.float32)
    value_in = jax.random.normal(k_v, (B, S, d_model), jnp.float32)
    out2, w2 = multi_headed_attention(prepared, x, key_in, value_in, mask)
    out2 = jax.block_until_ready(out2)
    ref_out2, ref_w2 = reference(raw, x, key_in, value_in, mask)
    assert jnp.allclose(out2, ref_out2, atol=5e-2, rtol=5e-2), "cross-attn output mismatch"
    assert jnp.allclose(w2.astype(jnp.float32), ref_w2, atol=2e-2, rtol=2e-2), \
        "cross-attn weights mismatch"

    # no-mask + no-weights fast path
    out3, w3 = multi_headed_attention(prepared, x, x, x, None, return_weights=False)
    out3 = jax.block_until_ready(out3)
    assert w3 is None
    ref_out3, _ = reference(raw, x, x, x, None)
    assert jnp.allclose(out3, ref_out3, atol=5e-2, rtol=5e-2), "no-mask output mismatch"

    # ---------------- Test 2: depth=128 -> BlockSpec head-split path (no transposes) -
    B2, S2, d_model2, num_heads2 = 2, 8, 256, 2
    raw2 = init_params(k_params2, d_model2, num_heads2)
    prepared2 = prepare_params(raw2)
    x2 = jax.random.normal(k_x2, (B2, S2, d_model2), jnp.float32)
    mask2 = (jnp.arange(S2)[None, :, None] < jnp.arange(S2)[None, None, :]).astype(
        jnp.float32)
    mask2 = jnp.broadcast_to(mask2, (B2, S2, S2))

    out4, w4 = multi_headed_attention(prepared2, x2, x2, x2, mask2)
    out4 = jax.block_until_ready(out4)
    w4 = jax.block_until_ready(w4)
    ref_out4, ref_w4 = reference(raw2, x2, x2, x2, mask2)
    assert jnp.allclose(out4, ref_out4, atol=5e-2, rtol=5e-2), \
        "blockspec-heads output mismatch"
    assert jnp.allclose(w4.astype(jnp.float32), ref_w4, atol=2e-2, rtol=2e-2), \
        "blockspec-heads weights mismatch"

    print("KERNEL_OK")
</pallas_src>

<mosaic_0001>
module attributes {stable_mosaic.version = 11 : i64} {
  func.func @_linear_kernel(%arg0: i32, %arg1: i32, %arg2: i32, %arg3: memref<16x32xf32, #tpu.memory_space<vmem>>, %arg4: memref<32x96xbf16, #tpu.memory_space<vmem>>, %arg5: memref<1x96xf32, #tpu.memory_space<vmem>>, %arg6: memref<16x96xbf16, #tpu.memory_space<vmem>>, %arg7: memref<16x96xf32, #tpu.memory_space<vmem>>) attributes {dimension_semantics = [#tpu.dimension_semantics<parallel>, #tpu.dimension_semantics<parallel>, #tpu.dimension_semantics<arbitrary>], iteration_bounds = array<i64: 1, 1, 1>, scalar_prefetch = 0 : i64, scratch_operands = 1 : i64, tpu.core_type = #tpu.core_type<tc>, window_params = [{transform_indices = @transform_0, window_bounds = array<i64: 16, 32>}, {transform_indices = @transform_1, window_bounds = array<i64: 32, 96>}, {transform_indices = @transform_2, window_bounds = array<i64: 1, 96>}, {transform_indices = @transform_3, window_bounds = array<i64: 16, 96>}]} {
    %c0_i32 = arith.constant 0 : i32
    %0 = arith.cmpi eq, %arg2, %c0_i32 : i32
    %1 = arith.extui %0 : i1 to i32
    %c0_i32_0 = arith.constant 0 : i32
    %2 = arith.cmpi ne, %1, %c0_i32_0 : i32
    scf.if %2 {
      %cst_10 = arith.constant 0.000000e+00 : f32
      %13 = vector.broadcast %cst_10 : f32 to vector<16x96xf32>
      %c0_11 = arith.constant 0 : index
      %c0_12 = arith.constant 0 : index
      %14 = vector.load %arg7[%c0_11, %c0_12] : memref<16x96xf32, #tpu.memory_space<vmem>>, vector<16x96xf32>
      tpu.vector_store %arg7[%c0_11, %c0_12], %13 {strides = array<i32>} : memref<16x96xf32, #tpu.memory_space<vmem>>, vector<16x96xf32>,
    } else {
    }
    %c0 = arith.constant 0 : index
    %c0_1 = arith.constant 0 : index
    %3 = vector.load %arg7[%c0, %c0_1] : memref<16x96xf32, #tpu.memory_space<vmem>>, vector<16x96xf32>
    %c0_2 = arith.constant 0 : index
    %c0_3 = arith.constant 0 : index
    %4 = vector.load %arg3[%c0_2, %c0_3] : memref<16x32xf32, #tpu.memory_space<vmem>>, vector<16x32xf32>
    %5 = arith.truncf %4 : vector<16x32xf32> to vector<16x32xbf16>
    %c0_4 = arith.constant 0 : index
    %c0_5 = arith.constant 0 : index
    %6 = vector.load %arg4[%c0_4, %c0_5] : memref<32x96xbf16, #tpu.memory_space<vmem>>, vector<32x96xbf16>
    %cst = arith.constant dense<0.000000e+00> : vector<16x96xf32>
    %7 = tpu.matmul %5, %6, %cst {dimension_numbers = #tpu.dot_dimension_numbers<[1], [0], [0], [1], [0, 0, 1, 1], [], []>} : vector<16x32xbf16>, vector<32x96xbf16>, vector<16x96xf32> -> vector<16x96xf32>
    %8 = arith.addf %3, %7 : vector<16x96xf32>
    %c0_6 = arith.constant 0 : index
    %c0_7 = arith.constant 0 : index
    %9 = vector.load %arg7[%c0_6, %c0_7] : memref<16x96xf32, #tpu.memory_space<vmem>>, vector<16x96xf32>
    tpu.vector_store %arg7[%c0_6, %c0_7], %8 {strides = array<i32>} : memref<16x96xf32, #tpu.memory_space<vmem>>, vector<16x96xf32>,
    %c0_i32_8 = arith.constant 0 : i32
    %10 = arith.cmpi eq, %arg2, %c0_i32_8 : i32
    %11 = arith.extui %10 : i1 to i32
    %c0_i32_9 = arith.constant 0 : i32
    %12 = arith.cmpi ne, %11, %c0_i32_9 : i32
    scf.if %12 {
      %c0_10 = arith.constant 0 : index
      %c0_11 = arith.constant 0 : index
      %13 = vector.load %arg7[%c0_10, %c0_11] : memref<16x96xf32, #tpu.memory_space<vmem>>, vector<16x96xf32>
      %c0_12 = arith.constant 0 : index
      %c0_13 = arith.constant 0 : index
      %14 = vector.load %arg5[%c0_12, %c0_13] : memref<1x96xf32, #tpu.memory_space<vmem>>, vector<1x96xf32>
      %15 = vector.broadcast %14 : vector<1x96xf32> to vector<16x96xf32>
      %16 = arith.addf %13, %15 : vector<16x96xf32>
      %17 = arith.truncf %16 : vector<16x96xf32> to vector<16x96xbf16>
      %c0_14 = arith.constant 0 : index
      %c0_15 = arith.constant 0 : index
      %18 = vector.load %arg6[%c0_14, %c0_15] : memref<16x96xbf16, #tpu.memory_space<vmem>>, vector<16x96xbf16>
      tpu.vector_store %arg6[%c0_14, %c0_15], %17 {strides = array<i32>} : memref<16x96xbf16, #tpu.memory_space<vmem>>, vector<16x96xbf16>,
    } else {
    }
    return
  }
  func.func @transform_0(%arg0: i32, %arg1: i32, %arg2: i32) -> (i32, i32) {
    %c0_i32 = arith.constant 0 : i32
    return %arg0, %arg2 : i32, i32
  }
  func.func @transform_1(%arg0: i32, %arg1: i32, %arg2: i32) -> (i32, i32) {
    %c0_i32 = arith.constant 0 : i32
    return %arg2, %arg1 : i32, i32
  }
  func.func @transform_2(%arg0: i32, %arg1: i32, %arg2: i32) -> (i32, i32) {
    %c0_i32 = arith.constant 0 : i32
    %c0_i32_0 = arith.constant 0 : i32
    return %c0_i32, %arg1 : i32, i32
  }
  func.func @transform_3(%arg0: i32, %arg1: i32, %arg2: i32) -> (i32, i32) {
    %c0_i32 = arith.constant 0 : i32
    return %arg0, %arg1 : i32, i32
  }
}

</mosaic_0001>

<bundles_post_ra>
// kernel: tpu_custom_call.1
= control target key start
LH: loop header
LB: loop body
LE: loop exit
PB: predicated region body
PF: predicated region fallthrough
CT: control target
= control target key end

     0   :  { %8 = vsyncpa [#allocation4], 0  ;;  %s283_s0 = inlined_call_operand.hbm [shape: f32[16,32], index: 0, kind: input, shape index: {}]   ;;  %s284_s1 = inlined_call_operand.hbm [shape: bf16[32,96], index: 1, kind: input, shape index: {}]   ;;  %s285_s2 = inlined_call_operand.vmem [shape: f32[1,96], index: 2, kind: input, shape index: {}]   ;;  %s286_s3 = inlined_call_operand.hbm [shape: bf16[16,96], index: 3, kind: output, shape index: {}]  }
   0x1   :  { %9 = vsyncpa [#allocation7], 0 }
   0x2   :  { %10 = vsyncpa [#allocation5], 0  ;;  %s15_s14 = sshll.u32 %s283_s0, 4  ;;  %s233_s15 = smov [#allocation3]   ;;  %s16_s14 = int_to_ptr.hbm [resolvable:$true] %s15_s14 }
   0x3   :  { %s17_s16 = sshll.u32 %s233_s15, 4  ;;  %s28_s19 = sshll.u32 %s284_s1, 4  ;;  %s18_s16 = int_to_ptr.vmem [resolvable:$true] %s17_s16  ;;  %s29_s19 = int_to_ptr.hbm [resolvable:$true] %s28_s19 }
   0x4   :  { %s234_s20 = smov 128   ;;  %s235_s21 = smov 8  }
   0x5   :  { %23 = dma.hbm_to_vmem [thread:$0]  %s16_s14, 256, %s18_s16, [#allocation4], %s234_s20, %s234_s20, %s235_s21  }
   0x6   :  { %s236_s22 = smov [#allocation6]   ;;  %s237_s24 = smov 64  }
   0x7   :  { %s30_s23 = sshll.u32 %s236_s22, 4  ;;  %s238_s25 = smov 4   ;;  %s31_s23 = int_to_ptr.vmem [resolvable:$true] %s30_s23 }
   0x8   :  { %36 = dma.hbm_to_vmem [thread:$0]  %s29_s19, 256, %s31_s23, [#allocation7], %s237_s24, %s237_s24, %s238_s25  }
   0x9   :  { %227 = dma.done.wait [#allocation4], 256  }
   0xa   :  { %228 = vsyncadd [#allocation4], 4294967040 }
   0xb   :  { %229 = dma.done.wait [#allocation7], 256  }
   0xc   :  { %230 = vsyncadd [#allocation7], 4294967040  ;;  %vm52_vm0 = vcmask 785408   ;;  %v239_v0 = vmov 0.0   ;;  %v145_v1 = vld [vmem:[#allocation6 + $0x8] sm:$0xff]  ;;  %v144_v2 = vld [vmem:[#allocation6] sm:$0xff] }
   0xd   :  { %53 = vst.msk [vmem:[#allocation2] sm:$0xff] %vm52_vm0, %v239_v0  ;;  %86 = vmatpush.bf16.msra.mxu0 %v145_v1  ;;  %v57_v3 = vld [vmem:[#allocation3] sm:$0xff]  ;;  %v58_v4 = vld [vmem:[#allocation3 + $0x8] sm:$0xff]  ;;  %vm76_vm1 = vcmask 261120   ;;  %v154_v10 = vld [vmem:[%s285_s2] ss:$0 sm:$0xff] }
   0xe   :  { %54 = vst.msk [vmem:[#allocation2 + $0x8] sm:$0xff] %vm52_vm0, %v239_v0  ;;  %v59_v5 = vpack.c.bf16 %v58_v4, %v57_v3  ;;  %vm112_vm2 = vcmask 781312   ;;  %s240_s26 = smov [#allocation8]   ;;  %s121_s30 = sshll.u32 %s286_s3, 4  ;;  %s122_s30 = int_to_ptr.hbm [resolvable:$true] %s121_s30 }
   0xf   :  { %s119_s27 = sshll.u32 %s240_s26, 4  ;;  %s120_s27 = int_to_ptr.vmem [resolvable:$true] %s119_s27 }
  0x11   :  { %87 = vmatpush.bf16.msra.mxu0 %v144_v2 }
  0x14   :  { %143 = vmatmul.msk.bf16.vlgmr.msra.gmra.mxu0 %vm76_vm1, %v59_v5  ;;  %v55_v6 = vld [vmem:[#allocation2] sm:$0xff] }
  0x15   :  { %v56_v9 = vld [vmem:[#allocation2 + $0x8] sm:$0xff] }
  0x91   :  { %v89_v7 = vpop.f32.mrf.mxu0 }
  0x92   :  { %v94_v8 = vadd.f32 %v89_v7, %v55_v6 }
  0x94   :  { %97 = vst.msk [vmem:[#allocation2] sm:$0xff] %vm52_vm0, %v94_v8 }
  0x99   :  { %v91_v11 = vpop.f32.mrf.mxu0 }
  0x9a   :  { %v95_v12 = vadd.f32 %v91_v11, %v56_v9 }
  0x9b   :  { %v102_v13 = vld [vmem:[#allocation2] sm:$0xff] }
  0x9c   :  { %98 = vst.msk [vmem:[#allocation2 + $0x8] sm:$0xff] %vm52_vm0, %v95_v12  ;;  %v108_v14 = vadd.f32 %v154_v10, %v102_v13 }
  0x9e   :  { %v110_v15 = vpack.c.bf16 %v108_v14, %v108_v14 }
  0xa0   :  { %113 = vst.msk [vmem:[#allocation8] sm:$0xf] %vm112_vm2, %v110_v15 }
  0xa3   :  { %v103_v16 = vld [vmem:[#allocation2 + $0x8] sm:$0xff] }
  0xa4   :  { %v109_v17 = vadd.f32 %v154_v10, %v103_v16 }
  0xa6   :  { %v111_v18 = vpack.c.bf16 %v109_v17, %v109_v17 }
  0xa8   :  { %114 = vst.msk [vmem:[#allocation8 + $0x4] sm:$0xf] %vm112_vm2, %v111_v18 }
  0xa9   :  { %127 = dma.vmem_to_hbm [thread:$0]  %s120_s27, 128, %s122_s30, [#allocation5], %s237_s24, %s237_s24, %s238_s25  }
  0xaa   :  { %231 = dma.done.wait [#allocation5], 128  }
  0xab   :  { %232 = vsyncadd [#allocation5], 4294967168 }
  0xac   :  { %132 = vsyncpa [#allocation4], 1 }
  0xad   :  { %133 = vsyncpa [#allocation7], 1 }
  0xae   :  { %134 = vsyncpa [#allocation5], 1 }

</bundles_post_ra>
